<compile_context>
chip_gen: v7x
topology: tpu7x:2x2x1
jax: 0.10.0
libtpu: 0.0.40
codegen_flags: <defaults>
</compile_context>

<pallas_src>
import functools

import jax
import jax.numpy as jnp
from jax import lax
from jax.experimental import pallas as pl
from jax.experimental.pallas import tpu as pltpu

LN_EPS = 1e-5  # torch nn.LayerNorm default


def _round_up(x, m):
    return ((x + m - 1) // m) * m


def _fused_mlp_kernel(x_ref, w0_ref, wrest_ref, bgb_ref, o_ref, *, num_layers, out_f):
    """x -> [Linear -> LayerNorm -> ELU] * num_layers, all resident in VMEM.

    x_ref:     (tile_m, in_f)              activation rows, TRUE feature width
    w0_ref:    (in_f, F_pad)               layer-0 weight (cols zero-padded)
    wrest_ref: (max(L-1,1), F_pad, F_pad)  layer 1.. weights (zero-padded)
    bgb_ref:   (L, 8, F_pad)               rows 0/1/2 = bias/gamma/beta (f32)
    o_ref:     (tile_m, out_f)             TRUE output width (no HBM padding)
    """
    f_pad = w0_ref.shape[-1]
    in_dtype = x_ref.dtype

    # Lane mask over the true features; hoisted out of the layer loop.
    lane = lax.broadcasted_iota(jnp.int32, (1, f_pad), 1)
    feat_mask = (lane < out_f).astype(jnp.float32)
    inv_out_f = jnp.float32(1.0 / out_f)

    x = x_ref[...]  # native dtype (bf16 stays bf16) feeds the MXU
    # Static unroll: L is small.
    # TODO(synk): use lax.fori_loop with dynamic wrest_ref[l] if L grows >~8.
    for l in range(num_layers):
        w = w0_ref[...] if l == 0 else wrest_ref[l - 1]   # (in_f|F_pad, F_pad)
        bgb = bgb_ref[l]                                  # (8, F_pad) f32
        bias, gamma, beta = bgb[0:1, :], bgb[1:2, :], bgb[2:3, :]

        # Linear (MXU).  Padded weight cols / bias lanes are zero, so padded
        # lanes of h are exactly zero.
        h = jnp.dot(x, w, preferred_element_type=jnp.float32) + bias

        # LayerNorm over the true out_f features (unmasked sum relies on the
        # zero-padded-lane invariant maintained by _pack_params).
        mean = jnp.sum(h, axis=-1, keepdims=True) * inv_out_f
        centered = (h - mean) * feat_mask                 # also kills padded lanes
        var = jnp.sum(centered * centered, axis=-1, keepdims=True) * inv_out_f
        normed = centered * (lax.rsqrt(var + LN_EPS) * gamma) + beta

        # ELU(alpha=1).  exp(0)-1 keeps padded lanes exactly zero.
        # TODO(synk): expm1 would be marginally more precise near zero.
        act = jnp.where(normed > 0, normed, jnp.exp(normed) - 1.0)

        x = act.astype(in_dtype)  # next MXU pass in native dtype
        # NOTE: for bf16 inputs this quantizes inter-layer activations to bf16.

    o_ref[...] = x[:, :out_f]


def _pack_params(params, f_pad, dtype):
    """Zero-pad / stack per-layer params into lane-dense, MXU-ready slabs."""
    w0, _, _, _ = params[0]
    in_f, out0 = w0.shape
    w0p = jnp.zeros((in_f, f_pad), dtype).at[:, :out0].set(w0.astype(dtype))

    rest, bgbs = [], []
    for li, (w, b, g, be) in enumerate(params):
        wi, wo = w.shape
        pk = jnp.zeros((8, f_pad), jnp.float32)
        pk = pk.at[0, :wo].set(b.astype(jnp.float32))
        pk = pk.at[1, :wo].set(g.astype(jnp.float32))
        pk = pk.at[2, :wo].set(be.astype(jnp.float32))
        bgbs.append(pk)
        if li > 0:
            wp = jnp.zeros((f_pad, f_pad), dtype).at[:wi, :wo].set(w.astype(dtype))
            rest.append(wp)
    if not rest:  # L == 1: dummy (unused) slab so pallas_call arity is fixed
        rest.append(jnp.zeros((f_pad, f_pad), dtype))
    return w0p, jnp.stack(rest), jnp.stack(bgbs)


@functools.partial(jax.jit, static_argnames=("tm",))
def mlp_forward(x, params, *, tm=1024):
    """Fused MLP forward.  x: [N, in_f]; params: list of (w[in,out], b, g, be)."""
    if not params:
        return x
    N, in_f = x.shape
    out_f = params[0][0].shape[1]
    L = len(params)
    Lr = max(L - 1, 1)

    # Lane-dense hidden width shared by every layer (multiple of 128).
    # (If hidden dims grow >=256 and the kernel leaves the HBM-bound regime,
    #  consider a 256 multiple to fill the v6e/v7x 256-wide MXU.)
    f_pad = _round_up(out_f, 128)
    w0p, wrest, bgb = _pack_params(params, f_pad, x.dtype)

    # ---- per-generation VMEM budget & row tiling ----------------------------
    xb = jnp.dtype(x.dtype).itemsize

    def _vmem_footprint(t):
        acts = 6 * t * f_pad * 4                          # live f32 intermediates
        io = 2 * t * (in_f + out_f) * xb                  # double-buffered x/out tiles
        wts = 2 * (in_f * f_pad + Lr * f_pad * f_pad) * xb + 2 * L * 8 * f_pad * 4
        return acts + io + wts

    try:  # v5e/v6e: 128 MiB physical, v7x: 64 MiB per TensorCore
        vmem_cap = int(pltpu.get_tpu_info().vmem_capacity_bytes)
    except Exception:
        vmem_cap = 64 * 1024 * 1024                       # conservative v7x floor
    vmem_budget = (vmem_cap * 3) // 4                     # headroom for Mosaic scratch

    sub = 16 if x.dtype == jnp.bfloat16 else 8
    # >= 2 grid steps so ("parallel",) can shard rows across v7x's two TCs;
    # harmless (+1 grid step) on single-TC v5e/v6e.
    tile_m = max(sub, min(tm, _round_up((N + 1) // 2, sub)))
    while tile_m > sub and _vmem_footprint(tile_m) > vmem_budget:
        tile_m = max(sub, _round_up(tile_m // 2, sub))
    grid_m = pl.cdiv(N, tile_m)  # partial last block is clipped by Pallas

    out = pl.pallas_call(
        functools.partial(_fused_mlp_kernel, num_layers=L, out_f=out_f),
        out_shape=jax.ShapeDtypeStruct((N, out_f), x.dtype),
        grid_spec=pltpu.PrefetchScalarGridSpec(
            num_scalar_prefetch=0,
            grid=(grid_m,),
            in_specs=[
                pl.BlockSpec((tile_m, in_f), lambda i: (i, 0)),          # x rows (true width)
                pl.BlockSpec((in_f, f_pad), lambda i: (0, 0)),           # layer-0 weight
                pl.BlockSpec((Lr, f_pad, f_pad), lambda i: (0, 0, 0)),   # layer 1.. weights
                pl.BlockSpec((L, 8, f_pad), lambda i: (0, 0, 0)),        # bias/gamma/beta
            ],
            out_specs=pl.BlockSpec((tile_m, out_f), lambda i: (i, 0)),   # true output width
        ),
        compiler_params=pltpu.CompilerParams(
            dimension_semantics=("parallel",),   # megacore-shard the row grid
            vmem_limit_bytes=vmem_budget,
        ),
    )(x, w0p, wrest, bgb)
    return out


def init_mlp_params(key, num_layers, in_channels, out_channels):
    """Params matching the torch module's shapes.

    Linear: weight U(-1/sqrt(fan_in), 1/sqrt(fan_in)) (torch default), stored
    transposed as [in_f, out_f].  LayerNorm: gamma=1, beta=0.
    """
    params = []
    cin = in_channels
    for _ in range(int(num_layers) - 1):
        key, kw, kb = jax.random.split(key, 3)
        bound = 1.0 / (cin ** 0.5)
        w = jax.random.uniform(kw, (cin, out_channels), jnp.float32,
                               minval=-bound, maxval=bound)
        b = jax.random.uniform(kb, (out_channels,), jnp.float32,
                               minval=-bound, maxval=bound)
        gamma = jnp.ones((out_channels,), jnp.float32)
        beta = jnp.zeros((out_channels,), jnp.float32)
        params.append((w, b, gamma, beta))
        cin = out_channels
    return params


if __name__ == "__main__":
    # args.num_layers = 3 -> 2 fused layers; args.dropout irrelevant in eval.
    num_layers = 3
    in_channels = 16
    out_channels = 32
    N = 64  # flattened batch rows

    key = jax.random.PRNGKey(0)
    kx, kp = jax.random.split(key)
    x = jax.random.normal(kx, (N, in_channels), jnp.float32)
    params = init_mlp_params(kp, num_layers, in_channels, out_channels)

    out = mlp_forward(x, params)
    jax.block_until_ready(out)

    # Pure-JAX reference.
    ref = x
    for (w, b, g, be) in params:
        h = ref @ w + b
        mu = h.mean(-1, keepdims=True)
        var = ((h - mu) ** 2).mean(-1, keepdims=True)
        hn = (h - mu) * jax.lax.rsqrt(var + LN_EPS) * g + be
        ref = jnp.where(hn > 0, hn, jnp.exp(hn) - 1.0)
    assert out.shape == ref.shape
    assert jnp.allclose(out, ref, atol=1e-5, rtol=1e-5), "mismatch vs reference"

    print("KERNEL_OK")
</pallas_src>

<mosaic_0001>
module attributes {stable_mosaic.version = 11 : i64} {
  func.func @_fused_mlp_kernel(%arg0: i32, %arg1: memref<32x16xf32, #tpu.memory_space<vmem>>, %arg2: memref<16x128xf32, #tpu.memory_space<vmem>>, %arg3: memref<1x128x128xf32, #tpu.memory_space<vmem>>, %arg4: memref<2x8x128xf32, #tpu.memory_space<vmem>>, %arg5: memref<32x32xf32, #tpu.memory_space<vmem>>) attributes {dimension_semantics = [#tpu.dimension_semantics<parallel>], iteration_bounds = array<i64: 2>, scalar_prefetch = 0 : i64, scratch_operands = 0 : i64, tpu.core_type = #tpu.core_type<tc>, window_params = [{transform_indices = @transform_0, window_bounds = array<i64: 32, 16>}, {pipeline_mode = #tpu.pipeline_mode<synchronous>, transform_indices = @transform_1, window_bounds = array<i64: 16, 128>}, {pipeline_mode = #tpu.pipeline_mode<synchronous>, transform_indices = @transform_2, window_bounds = array<i64: 1, 128, 128>}, {pipeline_mode = #tpu.pipeline_mode<synchronous>, transform_indices = @transform_3, window_bounds = array<i64: 2, 8, 128>}, {transform_indices = @transform_4, window_bounds = array<i64: 32, 32>}]} {
    %0 = tpu.iota {dimensions = array<i32: 1>} : vector<1x128xi32>
    %c32_i32 = arith.constant 32 : i32
    %1 = vector.broadcast %c32_i32 : i32 to vector<1x128xi32>
    %2 = arith.cmpi slt, %0, %1 : vector<1x128xi32>
    %3 = arith.extui %2 : vector<1x128xi1> to vector<1x128xi32>
    %4 = arith.sitofp %3 : vector<1x128xi32> to vector<1x128xf32>
    %c0 = arith.constant 0 : index
    %c0_0 = arith.constant 0 : index
    %5 = vector.load %arg1[%c0, %c0_0] : memref<32x16xf32, #tpu.memory_space<vmem>>, vector<32x16xf32>
    %c0_1 = arith.constant 0 : index
    %c0_2 = arith.constant 0 : index
    %6 = vector.load %arg2[%c0_1, %c0_2] : memref<16x128xf32, #tpu.memory_space<vmem>>, vector<16x128xf32>
    %c0_3 = arith.constant 0 : index
    %c0_4 = arith.constant 0 : index
    %c0_5 = arith.constant 0 : index
    %7 = vector.load %arg4[%c0_3, %c0_4, %c0_5] : memref<2x8x128xf32, #tpu.memory_space<vmem>>, vector<1x8x128xf32>
    %8 = vector.shape_cast %7 : vector<1x8x128xf32> to vector<8x128xf32>
    %9 = vector.extract_strided_slice %8 {offsets = [0, 0], sizes = [1, 128], strides = [1, 1]} : vector<8x128xf32> to vector<1x128xf32>
    %10 = vector.extract_strided_slice %8 {offsets = [1, 0], sizes = [1, 128], strides = [1, 1]} : vector<8x128xf32> to vector<1x128xf32>
    %11 = vector.extract_strided_slice %8 {offsets = [2, 0], sizes = [1, 128], strides = [1, 1]} : vector<8x128xf32> to vector<1x128xf32>
    %cst = arith.constant dense<0.000000e+00> : vector<32x128xf32>
    %12 = tpu.matmul %5, %6, %cst {dimension_numbers = #tpu.dot_dimension_numbers<[1], [0], [0], [1], [0, 0, 1, 1], [], []>} : vector<32x16xf32>, vector<16x128xf32>, vector<32x128xf32> -> vector<32x128xf32>
    %13 = vector.broadcast %9 : vector<1x128xf32> to vector<32x128xf32>
    %14 = arith.addf %12, %13 : vector<32x128xf32>
    %cst_6 = arith.constant dense<0.000000e+00> : vector<32xf32>
    %15 = vector.multi_reduction <add>, %14, %cst_6 [1] : vector<32x128xf32> to vector<32xf32>
    %16 = vector.shape_cast %15 : vector<32xf32> to vector<32x1xf32>
    %cst_7 = arith.constant 3.125000e-02 : f32
    %17 = vector.broadcast %cst_7 : f32 to vector<32x1xf32>
    %18 = arith.mulf %16, %17 : vector<32x1xf32>
    %19 = vector.broadcast %18 : vector<32x1xf32> to vector<32x128xf32>
    %20 = arith.subf %14, %19 : vector<32x128xf32>
    %21 = vector.broadcast %4 : vector<1x128xf32> to vector<32x128xf32>
    %22 = arith.mulf %20, %21 : vector<32x128xf32>
    %23 = arith.mulf %22, %22 : vector<32x128xf32>
    %cst_8 = arith.constant dense<0.000000e+00> : vector<32xf32>
    %24 = vector.multi_reduction <add>, %23, %cst_8 [1] : vector<32x128xf32> to vector<32xf32>
    %25 = vector.shape_cast %24 : vector<32xf32> to vector<32x1xf32>
    %cst_9 = arith.constant 3.125000e-02 : f32
    %26 = vector.broadcast %cst_9 : f32 to vector<32x1xf32>
    %27 = arith.mulf %25, %26 : vector<32x1xf32>
    %cst_10 = arith.constant 9.99999974E-6 : f32
    %28 = vector.broadcast %cst_10 : f32 to vector<32x1xf32>
    %29 = arith.addf %27, %28 : vector<32x1xf32>
    %30 = math.rsqrt %29 : vector<32x1xf32>
    %31 = vector.broadcast %30 : vector<32x1xf32> to vector<32x128xf32>
    %32 = vector.broadcast %10 : vector<1x128xf32> to vector<32x128xf32>
    %33 = arith.mulf %31, %32 : vector<32x128xf32>
    %34 = arith.mulf %22, %33 : vector<32x128xf32>
    %35 = vector.broadcast %11 : vector<1x128xf32> to vector<32x128xf32>
    %36 = arith.addf %34, %35 : vector<32x128xf32>
    %cst_11 = arith.constant 0.000000e+00 : f32
    %37 = vector.broadcast %cst_11 : f32 to vector<32x128xf32>
    %38 = arith.cmpf ogt, %36, %37 : vector<32x128xf32>
    %39 = math.exp %36 : vector<32x128xf32>
    %cst_12 = arith.constant 1.000000e+00 : f32
    %40 = vector.broadcast %cst_12 : f32 to vector<32x128xf32>
    %41 = arith.subf %39, %40 : vector<32x128xf32>
    %42 = arith.select %38, %36, %41 : vector<32x128xi1>, vector<32x128xf32>
    %c0_13 = arith.constant 0 : index
    %c0_14 = arith.constant 0 : index
    %c0_15 = arith.constant 0 : index
    %43 = vector.load %arg3[%c0_13, %c0_14, %c0_15] : memref<1x128x128xf32, #tpu.memory_space<vmem>>, vector<1x128x128xf32>
    %44 = vector.shape_cast %43 : vector<1x128x128xf32> to vector<128x128xf32>
    %c1 = arith.constant 1 : index
    %c0_16 = arith.constant 0 : index
    %c0_17 = arith.constant 0 : index
    %45 = vector.load %arg4[%c1, %c0_16, %c0_17] : memref<2x8x128xf32, #tpu.memory_space<vmem>>, vector<1x8x128xf32>
    %46 = vector.shape_cast %45 : vector<1x8x128xf32> to vector<8x128xf32>
    %47 = vector.extract_strided_slice %46 {offsets = [0, 0], sizes = [1, 128], strides = [1, 1]} : vector<8x128xf32> to vector<1x128xf32>
    %48 = vector.extract_strided_slice %46 {offsets = [1, 0], sizes = [1, 128], strides = [1, 1]} : vector<8x128xf32> to vector<1x128xf32>
    %49 = vector.extract_strided_slice %46 {offsets = [2, 0], sizes = [1, 128], strides = [1, 1]} : vector<8x128xf32> to vector<1x128xf32>
    %cst_18 = arith.constant dense<0.000000e+00> : vector<32x128xf32>
    %50 = tpu.matmul %42, %44, %cst_18 {dimension_numbers = #tpu.dot_dimension_numbers<[1], [0], [0], [1], [0, 0, 1, 1], [], []>} : vector<32x128xf32>, vector<128x128xf32>, vector<32x128xf32> -> vector<32x128xf32>
    %51 = vector.broadcast %47 : vector<1x128xf32> to vector<32x128xf32>
    %52 = arith.addf %50, %51 : vector<32x128xf32>
    %cst_19 = arith.constant dense<0.000000e+00> : vector<32xf32>
    %53 = vector.multi_reduction <add>, %52, %cst_19 [1] : vector<32x128xf32> to vector<32xf32>
    %54 = vector.shape_cast %53 : vector<32xf32> to vector<32x1xf32>
    %cst_20 = arith.constant 3.125000e-02 : f32
    %55 = vector.broadcast %cst_20 : f32 to vector<32x1xf32>
    %56 = arith.mulf %54, %55 : vector<32x1xf32>
    %57 = vector.broadcast %56 : vector<32x1xf32> to vector<32x128xf32>
    %58 = arith.subf %52, %57 : vector<32x128xf32>
    %59 = vector.broadcast %4 : vector<1x128xf32> to vector<32x128xf32>
    %60 = arith.mulf %58, %59 : vector<32x128xf32>
    %61 = arith.mulf %60, %60 : vector<32x128xf32>
    %cst_21 = arith.constant dense<0.000000e+00> : vector<32xf32>
    %62 = vector.multi_reduction <add>, %61, %cst_21 [1] : vector<32x128xf32> to vector<32xf32>
    %63 = vector.shape_cast %62 : vector<32xf32> to vector<32x1xf32>
    %cst_22 = arith.constant 3.125000e-02 : f32
    %64 = vector.broadcast %cst_22 : f32 to vector<32x1xf32>
    %65 = arith.mulf %63, %64 : vector<32x1xf32>
    %cst_23 = arith.constant 9.99999974E-6 : f32
    %66 = vector.broadcast %cst_23 : f32 to vector<32x1xf32>
    %67 = arith.addf %65, %66 : vector<32x1xf32>
    %68 = math.rsqrt %67 : vector<32x1xf32>
    %69 = vector.broadcast %68 : vector<32x1xf32> to vector<32x128xf32>
    %70 = vector.broadcast %48 : vector<1x128xf32> to vector<32x128xf32>
    %71 = arith.mulf %69, %70 : vector<32x128xf32>
    %72 = arith.mulf %60, %71 : vector<32x128xf32>
    %73 = vector.broadcast %49 : vector<1x128xf32> to vector<32x128xf32>
    %74 = arith.addf %72, %73 : vector<32x128xf32>
    %cst_24 = arith.constant 0.000000e+00 : f32
    %75 = vector.broadcast %cst_24 : f32 to vector<32x128xf32>
    %76 = arith.cmpf ogt, %74, %75 : vector<32x128xf32>
    %77 = math.exp %74 : vector<32x128xf32>
    %cst_25 = arith.constant 1.000000e+00 : f32
    %78 = vector.broadcast %cst_25 : f32 to vector<32x128xf32>
    %79 = arith.subf %77, %78 : vector<32x128xf32>
    %80 = arith.select %76, %74, %79 : vector<32x128xi1>, vector<32x128xf32>
    %81 = vector.extract_strided_slice %80 {offsets = [0, 0], sizes = [32, 32], strides = [1, 1]} : vector<32x128xf32> to vector<32x32xf32>
    %c0_26 = arith.constant 0 : index
    %c0_27 = arith.constant 0 : index
    %82 = vector.load %arg5[%c0_26, %c0_27] : memref<32x32xf32, #tpu.memory_space<vmem>>, vector<32x32xf32>
    tpu.vector_store %arg5[%c0_26, %c0_27], %81 {strides = array<i32>} : memref<32x32xf32, #tpu.memory_space<vmem>>, vector<32x32xf32>,
    return
  }
  func.func @transform_0(%arg0: i32) -> (i32, i32) {
    %c0_i32 = arith.constant 0 : i32
    %c0_i32_0 = arith.constant 0 : i32
    return %arg0, %c0_i32 : i32, i32
  }
  func.func @transform_1(%arg0: i32) -> (i32, i32) {
    %c0_i32 = arith.constant 0 : i32
    %c0_i32_0 = arith.constant 0 : i32
    %c0_i32_1 = arith.constant 0 : i32
    return %c0_i32, %c0_i32_0 : i32, i32
  }
  func.func @transform_2(%arg0: i32) -> (i32, i32, i32) {
    %c0_i32 = arith.constant 0 : i32
    %c0_i32_0 = arith.constant 0 : i32
    %c0_i32_1 = arith.constant 0 : i32
    %c0_i32_2 = arith.constant 0 : i32
    return %c0_i32, %c0_i32_0, %c0_i32_1 : i32, i32, i32
  }
  func.func @transform_3(%arg0: i32) -> (i32, i32, i32) {
    %c0_i32 = arith.constant 0 : i32
    %c0_i32_0 = arith.constant 0 : i32
    %c0_i32_1 = arith.constant 0 : i32
    %c0_i32_2 = arith.constant 0 : i32
    return %c0_i32, %c0_i32_0, %c0_i32_1 : i32, i32, i32
  }
  func.func @transform_4(%arg0: i32) -> (i32, i32) {
    %c0_i32 = arith.constant 0 : i32
    %c0_i32_0 = arith.constant 0 : i32
    return %arg0, %c0_i32 : i32, i32
  }
}

</mosaic_0001>

<bundles_post_ra>
// kernel: mlp_forward.1
= control target key start
LH: loop header
LB: loop body
LE: loop exit
PB: predicated region body
PF: predicated region fallthrough
CT: control target
= control target key end

     0   :  { %s861_s15 = smov 0   ;;  %s1001_s0 = inlined_call_operand.vmem [shape: f32[64,16], index: 0, kind: input, shape index: {}]   ;;  %s1002_s1 = inlined_call_operand.vmem [shape: f32[16,128], index: 1, kind: input, shape index: {}]   ;;  %s1003_s2 = inlined_call_operand.vmem [shape: f32[1,128,128], index: 2, kind: input, shape index: {}]   ;;  %s1004_s3 = inlined_call_operand.vmem [shape: f32[2,8,128], index: 3, kind: input, shape index: {}]   ;;  %s1005_s4 = inlined_call_operand.vmem [shape: f32[64,32], index: 4, kind: output, shape index: {}]  }
   0x1 LB: > { %s651_s16 = sadd.s32 4294967295, %s833_s15   ;;  %p655_p0 = scmp.ge.s32.totalorder %s833_s15, 1  ;;  %s833_s15 = sphi %s861_s15, %s14_s15  }
   0x2   : > { %p163_p1 = scmp.lt.s32.totalorder %s833_s15, 3 }
   0x4   : > { %p164_p2 = pnand %p655_p0, %p163_p1 }
   0x5   : > { %v210_v0 = vld [vmem:[%s1002_s1] sm:$0xff] (!%p164_p2)  ;;  %v211_v1 = vld [vmem:[%s1002_s1 + $0x8] sm:$0xff] (!%p164_p2)  ;;  %s656_s21 = sshll.u32 (!%p164_p2), %s651_s16, 2  ;;  %vm217_vm0 = vcmask (!%p164_p2), 130048   ;;  %v201_v7 = vlaneseq (!%p164_p2)  ;;  %v835_v23 = vmov (!%p164_p2), 0.0   ;;  %v401_v46 = vld [vmem:[%s1003_s2 + $0x10] sm:$0xff] (!%p164_p2) }
   0x6   : > { %167 = sbr.rel (%p164_p2) target bundleno = 1115 (0x45b), region = 36  ;;  %v750_v2 = vpack.c.bf16 (!%p164_p2), %v211_v1, %v210_v0  ;;  %p190_p3 = scmp.lt.s32.totalorder (!%p164_p2), %s656_s21, 7  ;;  %v889_v10 = vld [vmem:[%s1004_s3] sm:$0xff] (!%p164_p2)  ;;  %v400_v44 = vld [vmem:[%s1003_s2 + $0x8] sm:$0xff] (!%p164_p2)  ;;  %v402_v47 = vld [vmem:[%s1003_s2 + $0x18] sm:$0xff] (!%p164_p2)  ;;  %vm590_vm6 = vcmask (!%p164_p2), 261120  }
   0x7   : > { %v883_v8 = vshrl.u32 (!%p164_p2), %v201_v7, 7  ;;  %v202_v20 = vand.u32 (!%p164_p2), 127, %v201_v7  ;;  %v399_v43 = vld [vmem:[%s1003_s2] sm:$0xff] (!%p164_p2)  ;;  %v758_v48 = vpack.c.bf16 (!%p164_p2), %v402_v47, %v401_v46  ;;  %v404_v50 = vld [vmem:[%s1003_s2 + $0x28] sm:$0xff] (!%p164_p2)  ;;  %v405_v52 = vld [vmem:[%s1003_s2 + $0x30] sm:$0xff] (!%p164_p2) }
   0x8   : > { %751 = vmatprep.subr.bf16.mxu0 (!%p164_p2), %v750_v2  ;;  %v754_v45 = vpack.c.bf16 (!%p164_p2), %v400_v44, %v399_v43  ;;  %v403_v49 = vld [vmem:[%s1003_s2 + $0x20] sm:$0xff] (!%p164_p2)  ;;  %v406_v53 = vld [vmem:[%s1003_s2 + $0x38] sm:$0xff] (!%p164_p2)  ;;  %v408_v56 = vld [vmem:[%s1003_s2 + $0x48] sm:$0xff] (!%p164_p2) }
   0x9   : > { %753 = vmatpush3.bf16.msra.mxu0 (!%p164_p2), %v750_v2  ;;  %v215_v9 = vsub.s32 (!%p164_p2), 0, %v883_v8  ;;  %vm203_vm1 = vcmp.lt.s32.totalorder (!%p164_p2), %v202_v20, 32  ;;  %v762_v51 = vpack.c.bf16 (!%p164_p2), %v404_v50, %v403_v49  ;;  %v766_v54 = vpack.c.bf16 (!%p164_p2), %v406_v53, %v405_v52  ;;  %v407_v55 = vld [vmem:[%s1003_s2 + $0x40] sm:$0xff] (!%p164_p2)  ;;  %v409_v58 = vld [vmem:[%s1003_s2 + $0x50] sm:$0xff] (!%p164_p2)  ;;  %v410_v59 = vld [vmem:[%s1003_s2 + $0x58] sm:$0xff] (!%p164_p2) }
   0xa   : > { %v894_v24 = vsel (!%p164_p2), %vm203_vm1, 1.0, %v835_v23  ;;  %755 = vmatprep.subr.bf16.mxu1 (!%p164_p2), %v754_v45  ;;  %v770_v57 = vpack.c.bf16 (!%p164_p2), %v408_v56, %v407_v55  ;;  %v774_v60 = vpack.c.bf16 (!%p164_p2), %v410_v59, %v409_v58  ;;  %v411_v61 = vld [vmem:[%s1003_s2 + $0x60] sm:$0xff] (!%p164_p2)  ;;  %v412_v62 = vld [vmem:[%s1003_s2 + $0x68] sm:$0xff] (!%p164_p2)  ;;  %v413_v0 = vld [vmem:[%s1003_s2 + $0x70] sm:$0xff] (!%p164_p2)  ;;  %v373_v20 = vsub.s32 (!%p164_p2), 2, %v883_v8 }
   0xb   : > { %v216_v11 = vrot.slane (!%p164_p2), %v889_v10, %v215_v9  ;;  %757 = vmatpush3.bf16.msra.mxu1 (!%p164_p2), %v754_v45  ;;  %v778_v63 = vpack.c.bf16 (!%p164_p2), %v412_v62, %v411_v61  ;;  %v414_v1 = vld [vmem:[%s1003_s2 + $0x78] sm:$0xff] (!%p164_p2) }
   0xc   : > { %759 = vmatprep.subr.bf16.mxu1 (!%p164_p2), %v758_v48  ;;  %v782_v2 = vpack.c.bf16 (!%p164_p2), %v414_v1, %v413_v0  ;;  %v374_v23 = vrot.slane (!%p164_p2), %v889_v10, %v373_v20 }
   0xd   : > { %s1007_s21 = smov (!%p190_p3, %s656_s21), 7 }
   0xe   : > { %s657_s22 = sshll.u32 %s1007_s21, 3 }
   0xf   : > { %s193_s25 = scalar_lea.vmem %s1001_s0, %s657_s22  ;;  %761 = vmatpush3.bf16.msra.mxu1 %v758_v48  ;;  %s199_s16 = scalar_lea.vmem %s1005_s4, %s657_s22 }
  0x10   : > { %v206_v3 = vld [vmem:[%s193_s25] sm:$0xff]  ;;  %v207_v4 = vld [vmem:[%s193_s25 + $0x8] sm:$0xff]  ;;  %v208_v5 = vld [vmem:[%s193_s25 + $0x10] sm:$0xff]  ;;  %763 = vmatprep.subr.bf16.mxu1 %v762_v51 }
  0x11   : > { %706 = vmatprep.mubr.msk.f32.mxu0 %vm217_vm0, %v206_v3  ;;  %v209_v6 = vld [vmem:[%s193_s25 + $0x18] sm:$0xff] }
  0x12   : > { %707 = vmatmul.mubr.msk.f32.vlgmr.msra.gmra.mrb[0].mxu0 %vm217_vm0, %v207_v4 }
  0x13   : > { %709 = vmatprep.mubr.msk.f32.mxu0 %vm217_vm0, %v208_v5  ;;  %765 = vmatpush3.bf16.msra.mxu1 %v762_v51 }
  0x14   : > { %767 = vmatprep.subr.bf16.mxu1 %v766_v54 }
  0x16   : > { %710 = vmatmul.mubr.msk.f32.gmra.mrb[2].mxu0 %vm217_vm0, %v209_v6 }
  0x17   : > { %769 = vmatpush3.bf16.msra.mxu1 %v766_v54  ;;  %v669_v54 = vld [vmem:[%s1004_s3 + $0x8] sm:$0xff] }
  0x18   : > { %771 = vmatprep.subr.bf16.mxu1 %v770_v57  ;;  %v420_v55 = vrot.slane %v669_v54, %v215_v9 }
  0x1b   : > { %773 = vmatpush3.bf16.msra.mxu1 %v770_v57 }
  0x1c   : > { %775 = vmatprep.subr.bf16.mxu1 %v774_v60 }
  0x1f   : > { %777 = vmatpush3.bf16.msra.mxu1 %v774_v60 }
  0x20   : > { %779 = vmatprep.subr.bf16.mxu1 %v778_v63 }
  0x23   : > { %781 = vmatpush3.bf16.msra.mxu1 %v778_v63 }
  0x24   : > { %783 = vmatprep.subr.bf16.mxu1 %v782_v2 }
  0x27   : > { %785 = vmatpush3.bf16.msra.mxu1 %v782_v2 }
  0xe5   : > { %v708_v12 = vpop.f32.mrb[0].mxu0 }
  0xe6   : > { %v296_v13 = vpop.f32.mrb[1].mxu0  ;;  %v302_v17 = vadd.f32 %v708_v12, %v216_v11 }
  0xe7   : > { %v297_v14 = vadd.f32 %v296_v13, %v216_v11 }
  0xe9   : > { %v711_v15 = vpop.f32.mrb[2].mxu0  ;;  %315 = vadd.xlane.f32.xlu0 %v297_v14 }
  0xea   : > { %v306_v16 = vpop.f32.mrb[3].mxu0  ;;  %v312_v19 = vadd.f32 %v711_v15, %v216_v11  ;;  %v361_v15 = vsub.s32 1, %v883_v8 }
  0xeb   : > { %v307_v18 = vadd.f32 %v306_v16, %v216_v11 }
  0xed   : > { %319 = vadd.xlane.f32.xlu1 %v307_v18  ;;  %317 = vadd.xlane.f32.xlu0 %v302_v17 }
  0xf1   : > { %321 = vadd.xlane.f32.xlu1 %v312_v19 }
 0x176   : > { %v316_v21 = vpop.xlane.xlu0 %315 }
 0x177   : > { %v323_v22 = vmul.f32 0.03125, %v316_v21 }
 0x179   : > { %v327_v25 = vsub.f32 %v297_v14, %v323_v22 }
 0x17a   : > { %v320_v26 = vpop.xlane.xlu1 %319  ;;  %v318_v27 = vpop.xlane.xlu0 %317 }
 0x17b   : > { %v325_v28 = vmul.f32 0.03125, %v320_v26  ;;  %v324_v29 = vmul.f32 0.03125, %v318_v27  ;;  %v897_v30 = vmul.f32 %v894_v24, %v327_v25 }
 0x17d   : > { %v329_v31 = vsub.f32 %v307_v18, %v325_v28  ;;  %v328_v32 = vsub.f32 %v302_v17, %v324_v29  ;;  %v335_v33 = vmul.f32 %v897_v30, %v897_v30 }
 0x17e   : > { %v322_v34 = vpop.xlane.xlu1 %321 }
 0x17f   : > { %v326_v35 = vmul.f32 0.03125, %v322_v34  ;;  %339 = vadd.xlane.f32.xlu0 %v335_v33  ;;  %v902_v36 = vmul.f32 %v894_v24, %v329_v31  ;;  %v905_v37 = vmul.f32 %v894_v24, %v328_v32 }
 0x181   : > { %v330_v38 = vsub.f32 %v312_v19, %v326_v35  ;;  %v337_v39 = vmul.f32 %v902_v36, %v902_v36  ;;  %v336_v40 = vmul.f32 %v905_v37, %v905_v37  ;;  %v362_v19 = vrot.slane %v889_v10, %v361_v15 }
 0x183   : > { %343 = vadd.xlane.f32.xlu0 %v337_v39  ;;  %341 = vadd.xlane.f32.xlu1 %v336_v40  ;;  %v912_v41 = vmul.f32 %v894_v24, %v330_v38 }
 0x185   : > { %v338_v42 = vmul.f32 %v912_v41, %v912_v41 }
 0x187   : > { %345 = vadd.xlane.f32.xlu1 %v338_v42 }
 0x20c   : > { %v340_v3 = vpop.xlane.xlu0 %339 }
 0x20d   : > { %v347_v4 = vmul.f32 0.03125, %v340_v3 }
 0x20f   : > { %v351_v5 = vadd.f32 1e-05, %v347_v4 }
 0x210   : > { %v342_v6 = vpop.xlane.xlu1 %341  ;;  %v344_v7 = vpop.xlane.xlu0 %343 }
 0x211   : > { %795 = vrsqrt.f32 %v351_v5  ;;  %v348_v11 = vmul.f32 0.03125, %v342_v6  ;;  %v349_v12 = vmul.f32 0.03125, %v344_v7 }
 0x213   : > { %v352_v13 = vadd.f32 1e-05, %v348_v11  ;;  %v353_v14 = vadd.f32 1e-05, %v349_v12 }
 0x214   : > { %v346_v16 = vpop.xlane.xlu1 %345 }
 0x215   : > { %797 = vrsqrt.f32 %v352_v13  ;;  %v350_v17 = vmul.f32 0.03125, %v346_v16 }
 0x216   : > { %799 = vrsqrt.f32 %v353_v14 }
 0x217   : > { %v354_v18 = vadd.f32 1e-05, %v350_v17 }
 0x219   : > { %801 = vrsqrt.f32 %v354_v18 }
 0x21b   : > { %v796_v21 = vpop.eup %795 }
 0x21c   : > { %v363_v22 = vmul.f32 %v796_v21, %v362_v19 }
 0x21e   : > { %v367_v25 = vmul.f32 %v363_v22, %v897_v30 }
 0x21f   : > { %v798_v26 = vpop.eup %797 }
 0x220   : > { %v800_v27 = vpop.eup %799  ;;  %v375_v28 = vadd.f32 %v374_v23, %v367_v25  ;;  %v364_v29 = vmul.f32 %v798_v26, %v362_v19 }
 0x221   : > { %v365_v31 = vmul.f32 %v800_v27, %v362_v19 }
 0x222   : > { %v383_v32 = vmul.f32 1.442695, %v375_v28  ;;  %v368_v33 = vmul.f32 %v364_v29, %v905_v37  ;;  %vm379_vm2 = vcmp.gt.f32.partialorder %v375_v28, 0.0 }
 0x223   : > { %v802_v34 = vpop.eup %801  ;;  %v369_v35 = vmul.f32 %v365_v31, %v902_v36 }
 0x224   : > { %803 = vpow2.f32 %v383_v32  ;;  %v376_v38 = vadd.f32 %v374_v23, %v368_v33  ;;  %v366_v39 = vmul.f32 %v802_v34, %v362_v19 }
 0x225   : > { %v377_v40 = vadd.f32 %v374_v23, %v369_v35 }
 0x226   : > { %v385_v42 = vmul.f32 1.442695, %v376_v38  ;;  %v370_v10 = vmul.f32 %v366_v39, %v912_v41  ;;  %vm380_vm3 = vcmp.gt.f32.partialorder %v376_v38, 0.0 }
 0x227   : > { %v387_v43 = vmul.f32 1.442695, %v377_v40  ;;  %vm381_vm4 = vcmp.gt.f32.partialorder %v377_v40, 0.0 }
 0x228   : > { %805 = vpow2.f32 %v385_v42  ;;  %v378_v30 = vadd.f32 %v374_v23, %v370_v10  ;;  %v565_v10 = vrot.slane %v669_v54, %v373_v20 }
 0x229   : > { %807 = vpow2.f32 %v387_v43 }
 0x22a   : > { %v389_v44 = vmul.f32 1.442695, %v378_v30  ;;  %vm382_vm5 = vcmp.gt.f32.partialorder %v378_v30, 0.0 }
 0x22c   : > { %809 = vpow2.f32 %v389_v44 }
 0x22e   : > { %v804_v45 = vpop.eup %803 }
 0x22f   : > { %v665_v46 = vadd.f32 -1.0, %v804_v45 }
 0x231   : > { %v395_v37 = vsel %vm379_vm2, %v375_v28, %v665_v46 }
 0x232   : > { %v806_v47 = vpop.eup %805  ;;  %744 = vmatprep.mubr.f32.mxu1 %v395_v37 }
 0x233   : > { %v808_v36 = vpop.eup %807  ;;  %v666_v48 = vadd.f32 -1.0, %v806_v47 }
 0x234   : > { %v667_v49 = vadd.f32 -1.0, %v808_v36 }
 0x235   : > { %v396_v50 = vsel %vm380_vm3, %v376_v38, %v666_v48 }
 0x236   : > { %v810_v51 = vpop.eup %809  ;;  %745 = vmatmul.mubr.f32.vlgmr.msra.gmra.mrb[0].mxu1 %v396_v50  ;;  %v397_v41 = vsel %vm381_vm4, %v377_v40, %v667_v49 }
 0x237   : > { %747 = vmatprep.mubr.f32.mxu1 %v397_v41  ;;  %v668_v52 = vadd.f32 -1.0, %v810_v51 }
 0x239   : > { %v398_v53 = vsel %vm382_vm5, %v378_v30, %v668_v52 }
 0x23a   : > { %748 = vmatmul.mubr.f32.gmra.mrb[2].mxu1 %v398_v53 }
 0x309   : > { %v746_v56 = vpop.f32.mrb[0].mxu1 }
 0x30a   : > { %v493_v57 = vadd.f32 %v746_v56, %v420_v55  ;;  %v487_v58 = vpop.f32.mrb[1].mxu1 }
 0x30b   : > { %v488_v59 = vadd.f32 %v487_v58, %v420_v55 }
 0x30c   : > { %508 = vadd.xlane.f32.xlu1 %v493_v57 }
 0x30d   : > { %506 = vadd.xlane.f32.xlu0 %v488_v59  ;;  %v749_v60 = vpop.f32.mrb[2].mxu1 }
 0x30e   : > { %v503_v61 = vadd.f32 %v749_v60, %v420_v55  ;;  %v497_v62 = vpop.f32.mrb[3].mxu1 }
 0x30f   : > { %v498_v63 = vadd.f32 %v497_v62, %v420_v55 }
 0x310   : > { %512 = vadd.xlane.f32.xlu1 %v503_v61 }
 0x311   : > { %510 = vadd.xlane.f32.xlu0 %v498_v63 }
 0x399   : > { %v509_v0 = vpop.xlane.xlu1 %508 }
 0x39a   : > { %v515_v1 = vmul.f32 0.03125, %v509_v0  ;;  %v507_v2 = vpop.xlane.xlu0 %506 }
 0x39b   : > { %v514_v3 = vmul.f32 0.03125, %v507_v2 }
 0x39c   : > { %v519_v4 = vsub.f32 %v493_v57, %v515_v1 }
 0x39d   : > { %v518_v5 = vsub.f32 %v488_v59, %v514_v3  ;;  %v513_v6 = vpop.xlane.xlu1 %512 }
 0x39e   : > { %v517_v9 = vmul.f32 0.03125, %v513_v6  ;;  %v511_v7 = vpop.xlane.xlu0 %510  ;;  %v523_v11 = vmul.f32 %v894_v24, %v519_v4 }
 0x39f   : > { %v516_v12 = vmul.f32 0.03125, %v511_v7  ;;  %v522_v13 = vmul.f32 %v894_v24, %v518_v5 }
 0x3a0   : > { %v521_v14 = vsub.f32 %v503_v61, %v517_v9  ;;  %v527_v16 = vmul.f32 %v523_v11, %v523_v11 }
 0x3a1   : > { %v520_v17 = vsub.f32 %v498_v63, %v516_v12  ;;  %v526_v18 = vmul.f32 %v522_v13, %v522_v13 }
 0x3a2   : > { %532 = vadd.xlane.f32.xlu1 %v527_v16  ;;  %v525_v19 = vmul.f32 %v894_v24, %v521_v14 }
 0x3a3   : > { %530 = vadd.xlane.f32.xlu0 %v526_v18  ;;  %v524_v21 = vmul.f32 %v894_v24, %v520_v17  ;;  %v553_v24 = vrot.slane %v669_v54, %v361_v15 }
 0x3a4   : > { %v529_v22 = vmul.f32 %v525_v19, %v525_v19 }
 0x3a5   : > { %v528_v23 = vmul.f32 %v524_v21, %v524_v21 }
 0x3a6   : > { %536 = vadd.xlane.f32.xlu1 %v529_v22 }
 0x3a7   : > { %534 = vadd.xlane.f32.xlu0 %v528_v23 }
 0x42f   : > { %v533_v25 = vpop.xlane.xlu1 %532 }
 0x430   : > { %v539_v26 = vmul.f32 0.03125, %v533_v25  ;;  %v531_v27 = vpop.xlane.xlu0 %530 }
 0x431   : > { %v538_v28 = vmul.f32 0.03125, %v531_v27 }
 0x432   : > { %v543_v29 = vadd.f32 1e-05, %v539_v26 }
 0x433   : > { %v542_v31 = vadd.f32 1e-05, %v538_v28  ;;  %v537_v32 = vpop.xlane.xlu1 %536 }
 0x434   : > { %811 = vrsqrt.f32 %v543_v29  ;;  %v541_v33 = vmul.f32 0.03125, %v537_v32  ;;  %v535_v34 = vpop.xlane.xlu0 %534 }
 0x435   : > { %813 = vrsqrt.f32 %v542_v31  ;;  %v540_v35 = vmul.f32 0.03125, %v535_v34 }
 0x436   : > { %v545_v38 = vadd.f32 1e-05, %v541_v33 }
 0x437   : > { %v544_v39 = vadd.f32 1e-05, %v540_v35 }
 0x438   : > { %815 = vrsqrt.f32 %v545_v38 }
 0x439   : > { %817 = vrsqrt.f32 %v544_v39 }
 0x43e   : > { %v812_v40 = vpop.eup %811 }
 0x43f   : > { %v814_v42 = vpop.eup %813  ;;  %v555_v43 = vmul.f32 %v812_v40, %v553_v24 }
 0x440   : > { %v554_v30 = vmul.f32 %v814_v42, %v553_v24 }
 0x441   : > { %v559_v44 = vmul.f32 %v555_v43, %v523_v11 }
 0x442   : > { %v816_v45 = vpop.eup %815  ;;  %v558_v46 = vmul.f32 %v554_v30, %v522_v13 }
 0x443   : > { %v818_v37 = vpop.eup %817  ;;  %v567_v47 = vadd.f32 %v565_v10, %v559_v44  ;;  %v557_v36 = vmul.f32 %v816_v45, %v553_v24 }
 0x444   : > { %v566_v48 = vadd.f32 %v565_v10, %v558_v46  ;;  %v556_v49 = vmul.f32 %v818_v37, %v553_v24 }
 0x445   : > { %v576_v50 = vmul.f32 1.442695, %v567_v47  ;;  %v561_v51 = vmul.f32 %v557_v36, %v525_v19  ;;  %vm571_vm8 = vcmp.gt.f32.partialorder %v567_v47, 0.0 }
 0x446   : > { %v574_v41 = vmul.f32 1.442695, %v566_v48  ;;  %v560_v15 = vmul.f32 %v556_v49, %v524_v21  ;;  %vm570_vm7 = vcmp.gt.f32.partialorder %v566_v48, 0.0 }
 0x447   : > { %819 = vpow2.f32 %v576_v50  ;;  %v569_v52 = vadd.f32 %v565_v10, %v561_v51 }
 0x448   : > { %821 = vpow2.f32 %v574_v41  ;;  %v568_v8 = vadd.f32 %v565_v10, %v560_v15 }
 0x449   : > { %v580_v20 = vmul.f32 1.442695, %v569_v52  ;;  %vm573_vm10 = vcmp.gt.f32.partialorder %v569_v52, 0.0 }
 0x44a   : > { %v578_v53 = vmul.f32 1.442695, %v568_v8  ;;  %vm572_vm9 = vcmp.gt.f32.partialorder %v568_v8, 0.0 }
 0x44b   : > { %823 = vpow2.f32 %v580_v20 }
 0x44c   : > { %825 = vpow2.f32 %v578_v53 }
 0x451   : > { %v820_v54 = vpop.eup %819 }
 0x452   : > { %v822_v55 = vpop.eup %821  ;;  %v671_v56 = vadd.f32 -1.0, %v820_v54 }
 0x453   : > { %v670_v57 = vadd.f32 -1.0, %v822_v55 }
 0x454   : > { %v587_v61 = vsel %vm571_vm8, %v567_v47, %v671_v56 }
 0x455   : > { %v824_v58 = vpop.eup %823  ;;  %v586_v59 = vsel %vm570_vm7, %v566_v48, %v670_v57  ;;  %592 = vst.msk [vmem:[%s199_s16 + $0x8] sm:$0xff] %vm590_vm6, %v587_v61 }
 0x456   : > { %v826_v60 = vpop.eup %825  ;;  %591 = vst.msk [vmem:[%s199_s16] sm:$0xff] %vm590_vm6, %v586_v59  ;;  %v673_v62 = vadd.f32 -1.0, %v824_v58 }
 0x457   : > { %v672_v63 = vadd.f32 -1.0, %v826_v60 }
 0x458   : > { %v589_v1 = vsel %vm573_vm10, %v569_v52, %v673_v62 }
 0x459   : > { %v588_v0 = vsel %vm572_vm9, %v568_v8, %v672_v63  ;;  %594 = vst.msk [vmem:[%s199_s16 + $0x18] sm:$0xff] %vm590_vm6, %v589_v1 }
 0x45a   : > { %593 = vst.msk [vmem:[%s199_s16 + $0x10] sm:$0xff] %vm590_vm6, %v588_v0 }
 0x45b PF: > { %s14_s15 = sadd.s32 1, %s833_s15  }
 0x45c   : > { %p11_p4 = scmp.ge.s32.totalorder %s14_s15, 4  }
 0x45e   :  { %13 = sbr.rel (!%p11_p4) target bundleno = 1 (0x1), region = 67 }

</bundles_post_ra>
